<compile_context>
chip_gen: v5e
topology: v5e:2x2
jax: 0.10.0
libtpu: 0.0.40
codegen_flags: <defaults>
</compile_context>

<pallas_src>
import functools

import jax
import jax.numpy as jnp
from jax.experimental import pallas as pl
from jax.experimental.pallas import tpu as pltpu

EMBED = 32          # embedding_dimensions
BLOCK_SIZE = 10     # max context (causal mask source)
HEADS = 4           # head_count  -> head_size = 8
LN_EPS = 1e-5
MASK_NEG = -1e30    # finite "minus infinity" for the additive causal bias


def _normalize(x):
    """LayerNorm without the affine part (gamma/beta folded into weights)."""
    mu = jnp.mean(x, axis=-1, keepdims=True)
    var = jnp.mean((x - mu) * (x - mu), axis=-1, keepdims=True)
    return (x - mu) * jax.lax.rsqrt(var + LN_EPS)


def block_kernel(x_ref,
                 wqkv_ref, bqkv_ref,
                 wp_ref, bp_ref,
                 w1_ref, b1_ref,
                 w2_ref, b2_ref,
                 o_ref,
                 *, head_count):
    x = x_ref[...]                       # (1, T, C) f32 (one batch element)
    _, T, C = x.shape
    hs = C // head_count

    # ---- LayerNorm 1 (affine folded into wqkv/bqkv) ------------------------
    xn = _normalize(x)

    # ---- Fused QKV projection (scale folded into the Q columns) -----------
    qkv = jnp.einsum('btc,cd->btd', xn, wqkv_ref[...],
                     preferred_element_type=jnp.float32) + bqkv_ref[...]  # (1,T,3C)

    # ---- Causal mask as additive bias --------------------------------------
    row = jax.lax.broadcasted_iota(jnp.int32, (T, T), 0)
    col = jax.lax.broadcasted_iota(jnp.int32, (T, T), 1)
    mask_bias = jnp.where(row >= col, 0.0, MASK_NEG)[None, :, :]  # (1, T, T)

    # ---- Multi-head causal self-attention ----------------------------------
    # Static unrolled loop over heads; output projection folded per head so
    # there is no lane-misaligned concat of (.., hs) slabs.
    attn = jnp.zeros_like(x)
    for h in range(head_count):
        q_h = qkv[:, :, h * hs:(h + 1) * hs]
        k_h = qkv[:, :, C + h * hs:C + (h + 1) * hs]
        v_h = qkv[:, :, 2 * C + h * hs:2 * C + (h + 1) * hs]

        wei = jnp.einsum('btd,bsd->bts', q_h, k_h,
                         preferred_element_type=jnp.float32) + mask_bias
        m = jnp.max(wei, axis=-1, keepdims=True)
        p = jnp.exp(wei - m)
        inv = pl.reciprocal(jnp.sum(p, axis=-1, keepdims=True), approx=True)
        p = p * inv
        # TODO(synk): attention-weight dropout omitted (eval-mode identity).
        o_h = jnp.einsum('bts,bsd->btd', p, v_h,
                         preferred_element_type=jnp.float32)          # (1,T,hs)
        attn = attn + jnp.einsum('btd,dc->btc', o_h, wp_ref[h],
                                 preferred_element_type=jnp.float32)  # (1,T,C)

    x1 = x + attn + bp_ref[...]          # residual 1 (+ projection bias)

    # ---- LayerNorm 2 (affine folded into w1/b1) + FeedForward ---------------
    x1n = _normalize(x1)
    h1 = jnp.einsum('btc,cd->btd', x1n, w1_ref[...],
                    preferred_element_type=jnp.float32) + b1_ref[...]
    h1 = jnp.maximum(h1, 0.0)            # ReLU
    ff = jnp.einsum('btd,dc->btc', h1, w2_ref[...],
                    preferred_element_type=jnp.float32) + b2_ref[...]

    o_ref[...] = x1 + ff                 # residual 2


def init_params(key, embed=EMBED, heads=HEADS):
    """Deterministic parameter init (PyTorch-like uniform(-1/sqrt(in), 1/sqrt(in)))."""
    hidden = 4 * embed
    ks = jax.random.split(key, 10)

    def lin(k, fan_in, fan_out, bias=True):
        bound = 1.0 / (fan_in ** 0.5)
        kw, kb = jax.random.split(k)
        w = jax.random.uniform(kw, (fan_in, fan_out), jnp.float32, -bound, bound)
        if not bias:
            return w, None
        b = jax.random.uniform(kb, (1, fan_out), jnp.float32, -bound, bound)
        return w, b

    wq, _ = lin(ks[0], embed, embed, bias=False)
    wk, _ = lin(ks[1], embed, embed, bias=False)
    wv, _ = lin(ks[2], embed, embed, bias=False)
    wp, bp = lin(ks[3], embed, embed)
    w1, b1 = lin(ks[4], embed, hidden)
    w2, b2 = lin(ks[5], hidden, embed)

    return dict(
        ln1_g=jnp.ones((1, embed), jnp.float32),
        ln1_b=jnp.zeros((1, embed), jnp.float32),
        ln2_g=jnp.ones((1, embed), jnp.float32),
        ln2_b=jnp.zeros((1, embed), jnp.float32),
        wq=wq, wk=wk, wv=wv, wp=wp, bp=bp,
        w1=w1, b1=b1, w2=w2, b2=b2,
    )


def _fold_params(params, heads):
    """Fold LN affine params + attention scale into the matmul weights (free)."""
    C = params['wq'].shape[0]
    hs = C // heads
    scale = float(hs) ** -0.5

    g1 = params['ln1_g'].reshape(-1)          # (C,)
    beta1 = params['ln1_b'].reshape(-1)       # (C,)
    wqkv = jnp.concatenate([params['wq'] * scale, params['wk'], params['wv']],
                           axis=1)            # (C, 3C)
    wqkv_f = g1[:, None] * wqkv               # diag(gamma1) @ W
    bqkv_f = (beta1 @ wqkv)[None, :]          # (1, 3C)

    g2 = params['ln2_g'].reshape(-1)
    beta2 = params['ln2_b'].reshape(-1)
    w1_f = g2[:, None] * params['w1']                                  # (C, 4C)
    b1_f = (params['b1'].reshape(-1) + beta2 @ params['w1'])[None, :]  # (1, 4C)

    wp_r = params['wp'].reshape(heads, hs, C)  # per-head output projection

    return wqkv_f, bqkv_f, wp_r, params['bp'], w1_f, b1_f, params['w2'], params['b2']


@jax.jit
def block_forward(x, params):
    B, T, C = x.shape
    H = HEADS
    hs = C // H
    hidden = 4 * C
    assert T <= BLOCK_SIZE, "sequence length exceeds block_size"
    assert C % H == 0

    wqkv, bqkv, wp, bp, w1, b1, w2, b2 = _fold_params(params, H)

    in_specs = [
        pl.BlockSpec((1, T, C), lambda b: (b, 0, 0)),       # x: one batch row
        pl.BlockSpec((C, 3 * C), lambda b: (0, 0)),         # fused QKV weight
        pl.BlockSpec((1, 3 * C), lambda b: (0, 0)),         # fused QKV bias
        pl.BlockSpec((H, hs, C), lambda b: (0, 0, 0)),      # per-head out proj
        pl.BlockSpec((1, C), lambda b: (0, 0)),             # proj bias
        pl.BlockSpec((C, hidden), lambda b: (0, 0)),        # FFN W1 (LN2 folded)
        pl.BlockSpec((1, hidden), lambda b: (0, 0)),        # FFN b1 (LN2 folded)
        pl.BlockSpec((hidden, C), lambda b: (0, 0)),        # FFN W2
        pl.BlockSpec((1, C), lambda b: (0, 0)),             # FFN b2
    ]
    out_specs = pl.BlockSpec((1, T, C), lambda b: (b, 0, 0))

    return pl.pallas_call(
        functools.partial(block_kernel, head_count=H),
        out_shape=jax.ShapeDtypeStruct((B, T, C), jnp.float32),
        grid=(B,),
        in_specs=in_specs,
        out_specs=out_specs,
        compiler_params=pltpu.CompilerParams(
            dimension_semantics=("parallel",)),
    )(x, wqkv, bqkv, wp, bp, w1, b1, w2, b2)


def block_forward_ref(x, params):
    """Pure-JAX reference (unfolded params, exact softmax) for sanity checking."""
    def ln(x, g, b):
        mu = x.mean(-1, keepdims=True)
        var = ((x - mu) ** 2).mean(-1, keepdims=True)
        return (x - mu) / jnp.sqrt(var + LN_EPS) * g + b

    B, T, C = x.shape
    hs = C // HEADS
    xn = ln(x, params['ln1_g'], params['ln1_b'])
    q = xn @ params['wq']
    k = xn @ params['wk']
    v = xn @ params['wv']
    mask = jnp.tril(jnp.ones((T, T), bool))
    outs = []
    for h in range(HEADS):
        sl = slice(h * hs, (h + 1) * hs)
        wei = jnp.einsum('btd,bsd->bts', q[..., sl], k[..., sl]) * hs ** -0.5
        wei = jnp.where(mask, wei, -jnp.inf)
        wei = jax.nn.softmax(wei, axis=-1)
        outs.append(jnp.einsum('bts,bsd->btd', wei, v[..., sl]))
    attn = jnp.concatenate(outs, -1) @ params['wp'] + params['bp']
    x1 = x + attn
    x1n = ln(x1, params['ln2_g'], params['ln2_b'])
    ff = jnp.maximum(x1n @ params['w1'] + params['b1'], 0.0) @ params['w2'] + params['b2']
    return x1 + ff


if __name__ == "__main__":
    key = jax.random.PRNGKey(0)
    kx, kp = jax.random.split(key)

    B, T, C = 2, 8, EMBED          # T <= block_size (10)
    x = jax.random.normal(kx, (B, T, C), jnp.float32)
    params = init_params(kp)

    out = jax.block_until_ready(block_forward(x, params))
    ref = block_forward_ref(x, params)

    assert out.shape == (B, T, C)
    # tolerance relaxed slightly because of the approximate (EUP) softmax
    # reciprocal; typical max-abs error observed is well under 1e-3.
    assert jnp.allclose(out, ref, atol=2e-3, rtol=2e-3), (
        f"max abs err {jnp.max(jnp.abs(out - ref))}")

    print("KERNEL_OK")
</pallas_src>

<mosaic_0001>
module attributes {stable_mosaic.version = 11 : i64} {
  func.func @block_kernel(%arg0: i32, %arg1: memref<1x8x32xf32, #tpu.memory_space<vmem>>, %arg2: memref<32x96xf32, #tpu.memory_space<vmem>>, %arg3: memref<1x96xf32, #tpu.memory_space<vmem>>, %arg4: memref<4x8x32xf32, #tpu.memory_space<vmem>>, %arg5: memref<1x32xf32, #tpu.memory_space<vmem>>, %arg6: memref<32x128xf32, #tpu.memory_space<vmem>>, %arg7: memref<1x128xf32, #tpu.memory_space<vmem>>, %arg8: memref<128x32xf32, #tpu.memory_space<vmem>>, %arg9: memref<1x32xf32, #tpu.memory_space<vmem>>, %arg10: memref<1x8x32xf32, #tpu.memory_space<vmem>>) attributes {dimension_semantics = [#tpu.dimension_semantics<parallel>], iteration_bounds = array<i64: 2>, scalar_prefetch = 0 : i64, scratch_operands = 0 : i64, tpu.core_type = #tpu.core_type<tc>, window_params = [{transform_indices = @transform_0, window_bounds = array<i64: 1, 8, 32>}, {pipeline_mode = #tpu.pipeline_mode<synchronous>, transform_indices = @transform_1, window_bounds = array<i64: 32, 96>}, {pipeline_mode = #tpu.pipeline_mode<synchronous>, transform_indices = @transform_2, window_bounds = array<i64: 1, 96>}, {pipeline_mode = #tpu.pipeline_mode<synchronous>, transform_indices = @transform_3, window_bounds = array<i64: 4, 8, 32>}, {pipeline_mode = #tpu.pipeline_mode<synchronous>, transform_indices = @transform_4, window_bounds = array<i64: 1, 32>}, {pipeline_mode = #tpu.pipeline_mode<synchronous>, transform_indices = @transform_5, window_bounds = array<i64: 32, 128>}, {pipeline_mode = #tpu.pipeline_mode<synchronous>, transform_indices = @transform_6, window_bounds = array<i64: 1, 128>}, {pipeline_mode = #tpu.pipeline_mode<synchronous>, transform_indices = @transform_7, window_bounds = array<i64: 128, 32>}, {pipeline_mode = #tpu.pipeline_mode<synchronous>, transform_indices = @transform_8, window_bounds = array<i64: 1, 32>}, {transform_indices = @transform_9, window_bounds = array<i64: 1, 8, 32>}]} {
    %c0 = arith.constant 0 : index
    %c0_0 = arith.constant 0 : index
    %c0_1 = arith.constant 0 : index
    %0 = vector.load %arg1[%c0, %c0_0, %c0_1] : memref<1x8x32xf32, #tpu.memory_space<vmem>>, vector<1x8x32xf32>
    %cst = arith.constant dense<0.000000e+00> : vector<1x8xf32>
    %1 = vector.multi_reduction <add>, %0, %cst [2] : vector<1x8x32xf32> to vector<1x8xf32>
    %2 = vector.shape_cast %1 : vector<1x8xf32> to vector<1x8x1xf32>
    %cst_2 = arith.constant 3.200000e+01 : f32
    %3 = vector.broadcast %cst_2 : f32 to vector<1x8x1xf32>
    %4 = arith.divf %2, %3 : vector<1x8x1xf32>
    %5 = vector.broadcast %4 : vector<1x8x1xf32> to vector<1x8x32xf32>
    %6 = arith.subf %0, %5 : vector<1x8x32xf32>
    %7 = vector.broadcast %4 : vector<1x8x1xf32> to vector<1x8x32xf32>
    %8 = arith.subf %0, %7 : vector<1x8x32xf32>
    %9 = arith.mulf %6, %8 : vector<1x8x32xf32>
    %cst_3 = arith.constant dense<0.000000e+00> : vector<1x8xf32>
    %10 = vector.multi_reduction <add>, %9, %cst_3 [2] : vector<1x8x32xf32> to vector<1x8xf32>
    %11 = vector.shape_cast %10 : vector<1x8xf32> to vector<1x8x1xf32>
    %cst_4 = arith.constant 3.200000e+01 : f32
    %12 = vector.broadcast %cst_4 : f32 to vector<1x8x1xf32>
    %13 = arith.divf %11, %12 : vector<1x8x1xf32>
    %14 = vector.broadcast %4 : vector<1x8x1xf32> to vector<1x8x32xf32>
    %15 = arith.subf %0, %14 : vector<1x8x32xf32>
    %cst_5 = arith.constant 9.99999974E-6 : f32
    %16 = vector.broadcast %cst_5 : f32 to vector<1x8x1xf32>
    %17 = arith.addf %13, %16 : vector<1x8x1xf32>
    %18 = math.rsqrt %17 : vector<1x8x1xf32>
    %19 = vector.broadcast %18 : vector<1x8x1xf32> to vector<1x8x32xf32>
    %20 = arith.mulf %15, %19 : vector<1x8x32xf32>
    %c0_6 = arith.constant 0 : index
    %c0_7 = arith.constant 0 : index
    %21 = vector.load %arg2[%c0_6, %c0_7] : memref<32x96xf32, #tpu.memory_space<vmem>>, vector<32x96xf32>
    "tpu.trace_start"() <{level = 10 : i32, message = "btc,cd->btd"}> : () -> ()
    %cst_8 = arith.constant dense<0.000000e+00> : vector<1x8x96xf32>
    %22 = tpu.matmul %20, %21, %cst_8 {dimension_numbers = #tpu.dot_dimension_numbers<[2], [0], [0, 1], [1], [0, 0, 0, 1, 1, 1], [], []>} : vector<1x8x32xf32>, vector<32x96xf32>, vector<1x8x96xf32> -> vector<1x8x96xf32>
    "tpu.trace_stop"() : () -> ()
    %c0_9 = arith.constant 0 : index
    %c0_10 = arith.constant 0 : index
    %23 = vector.load %arg3[%c0_9, %c0_10] : memref<1x96xf32, #tpu.memory_space<vmem>>, vector<1x96xf32>
    %24 = vector.shape_cast %23 : vector<1x96xf32> to vector<1x1x96xf32>
    %25 = vector.broadcast %24 : vector<1x1x96xf32> to vector<1x8x96xf32>
    %26 = arith.addf %22, %25 : vector<1x8x96xf32>
    %27 = tpu.iota {dimensions = array<i32: 0>} : vector<8x8xi32>
    %28 = tpu.iota {dimensions = array<i32: 1>} : vector<8x8xi32>
    %29 = arith.cmpi sge, %27, %28 : vector<8x8xi32>
    %cst_11 = arith.constant 0.000000e+00 : f32
    %cst_12 = arith.constant -1.000000e+30 : f32
    %30 = vector.broadcast %cst_11 : f32 to vector<8x8xf32>
    %31 = vector.broadcast %cst_12 : f32 to vector<8x8xf32>
    %32 = arith.select %29, %30, %31 : vector<8x8xi1>, vector<8x8xf32>
    %33 = vector.shape_cast %32 : vector<8x8xf32> to vector<1x8x8xf32>
    %cst_13 = arith.constant 0.000000e+00 : f32
    %34 = vector.broadcast %cst_13 : f32 to vector<1x8x32xf32>
    %35 = vector.extract_strided_slice %26 {offsets = [0, 0, 0], sizes = [1, 8, 8], strides = [1, 1, 1]} : vector<1x8x96xf32> to vector<1x8x8xf32>
    %36 = vector.extract_strided_slice %26 {offsets = [0, 0, 32], sizes = [1, 8, 8], strides = [1, 1, 1]} : vector<1x8x96xf32> to vector<1x8x8xf32>
    %37 = vector.extract_strided_slice %26 {offsets = [0, 0, 64], sizes = [1, 8, 8], strides = [1, 1, 1]} : vector<1x8x96xf32> to vector<1x8x8xf32>
    "tpu.trace_start"() <{level = 10 : i32, message = "btd,bsd->bts"}> : () -> ()
    %cst_14 = arith.constant dense<0.000000e+00> : vector<1x8x8xf32>
    %38 = tpu.matmul %35, %36, %cst_14 {dimension_numbers = #tpu.dot_dimension_numbers<[2], [2], [1], [1], [0, 0, 0, 1, 1, 1], [0], [0]>} : vector<1x8x8xf32>, vector<1x8x8xf32>, vector<1x8x8xf32> -> vector<1x8x8xf32>
    "tpu.trace_stop"() : () -> ()
    %39 = arith.addf %38, %33 : vector<1x8x8xf32>
    %cst_15 = arith.constant dense<0xFF800000> : vector<1x8xf32>
    %40 = vector.multi_reduction <maximumf>, %39, %cst_15 [2] : vector<1x8x8xf32> to vector<1x8xf32>
    %41 = vector.shape_cast %40 : vector<1x8xf32> to vector<1x8x1xf32>
    %42 = vector.broadcast %41 : vector<1x8x1xf32> to vector<1x8x8xf32>
    %43 = arith.subf %39, %42 : vector<1x8x8xf32>
    %44 = math.exp %43 : vector<1x8x8xf32>
    %cst_16 = arith.constant dense<0.000000e+00> : vector<1x8xf32>
    %45 = vector.multi_reduction <add>, %44, %cst_16 [2] : vector<1x8x8xf32> to vector<1x8xf32>
    %46 = vector.shape_cast %45 : vector<1x8xf32> to vector<1x8x1xf32>
    %47 = tpu.reciprocal %46 {approx = true} : vector<1x8x1xf32> -> vector<1x8x1xf32>
    %48 = vector.broadcast %47 : vector<1x8x1xf32> to vector<1x8x8xf32>
    %49 = arith.mulf %44, %48 : vector<1x8x8xf32>
    "tpu.trace_start"() <{level = 10 : i32, message = "bts,bsd->btd"}> : () -> ()
    %cst_17 = arith.constant dense<0.000000e+00> : vector<1x8x8xf32>
    %50 = tpu.matmul %49, %37, %cst_17 {dimension_numbers = #tpu.dot_dimension_numbers<[2], [1], [1], [2], [0, 0, 0, 1, 1, 2], [0], [0]>} : vector<1x8x8xf32>, vector<1x8x8xf32>, vector<1x8x8xf32> -> vector<1x8x8xf32>
    "tpu.trace_stop"() : () -> ()
    %c0_18 = arith.constant 0 : index
    %c0_19 = arith.constant 0 : index
    %c0_20 = arith.constant 0 : index
    %51 = vector.load %arg4[%c0_18, %c0_19, %c0_20] : memref<4x8x32xf32, #tpu.memory_space<vmem>>, vector<1x8x32xf32>
    %52 = vector.shape_cast %51 : vector<1x8x32xf32> to vector<8x32xf32>
    "tpu.trace_start"() <{level = 10 : i32, message = "btd,dc->btc"}> : () -> ()
    %cst_21 = arith.constant dense<0.000000e+00> : vector<1x8x32xf32>
    %53 = tpu.matmul %50, %52, %cst_21 {dimension_numbers = #tpu.dot_dimension_numbers<[2], [0], [0, 1], [1], [0, 0, 0, 1, 1, 1], [], []>} : vector<1x8x8xf32>, vector<8x32xf32>, vector<1x8x32xf32> -> vector<1x8x32xf32>
    "tpu.trace_stop"() : () -> ()
    %54 = arith.addf %34, %53 : vector<1x8x32xf32>
    %55 = vector.extract_strided_slice %26 {offsets = [0, 0, 8], sizes = [1, 8, 8], strides = [1, 1, 1]} : vector<1x8x96xf32> to vector<1x8x8xf32>
    %56 = vector.extract_strided_slice %26 {offsets = [0, 0, 40], sizes = [1, 8, 8], strides = [1, 1, 1]} : vector<1x8x96xf32> to vector<1x8x8xf32>
    %57 = vector.extract_strided_slice %26 {offsets = [0, 0, 72], sizes = [1, 8, 8], strides = [1, 1, 1]} : vector<1x8x96xf32> to vector<1x8x8xf32>
    "tpu.trace_start"() <{level = 10 : i32, message = "btd,bsd->bts"}> : () -> ()
    %cst_22 = arith.constant dense<0.000000e+00> : vector<1x8x8xf32>
    %58 = tpu.matmul %55, %56, %cst_22 {dimension_numbers = #tpu.dot_dimension_numbers<[2], [2], [1], [1], [0, 0, 0, 1, 1, 1], [0], [0]>} : vector<1x8x8xf32>, vector<1x8x8xf32>, vector<1x8x8xf32> -> vector<1x8x8xf32>
    "tpu.trace_stop"() : () -> ()
    %59 = arith.addf %58, %33 : vector<1x8x8xf32>
    %cst_23 = arith.constant dense<0xFF800000> : vector<1x8xf32>
    %60 = vector.multi_reduction <maximumf>, %59, %cst_23 [2] : vector<1x8x8xf32> to vector<1x8xf32>
    %61 = vector.shape_cast %60 : vector<1x8xf32> to vector<1x8x1xf32>
    %62 = vector.broadcast %61 : vector<1x8x1xf32> to vector<1x8x8xf32>
    %63 = arith.subf %59, %62 : vector<1x8x8xf32>
    %64 = math.exp %63 : vector<1x8x8xf32>
    %cst_24 = arith.constant dense<0.000000e+00> : vector<1x8xf32>
    %65 = vector.multi_reduction <add>, %64, %cst_24 [2] : vector<1x8x8xf32> to vector<1x8xf32>
    %66 = vector.shape_cast %65 : vector<1x8xf32> to vector<1x8x1xf32>
    %67 = tpu.reciprocal %66 {approx = true} : vector<1x8x1xf32> -> vector<1x8x1xf32>
    %68 = vector.broadcast %67 : vector<1x8x1xf32> to vector<1x8x8xf32>
    %69 = arith.mulf %64, %68 : vector<1x8x8xf32>
    "tpu.trace_start"() <{level = 10 : i32, message = "bts,bsd->btd"}> : () -> ()
    %cst_25 = arith.constant dense<0.000000e+00> : vector<1x8x8xf32>
    %70 = tpu.matmul %69, %57, %cst_25 {dimension_numbers = #tpu.dot_dimension_numbers<[2], [1], [1], [2], [0, 0, 0, 1, 1, 2], [0], [0]>} : vector<1x8x8xf32>, vector<1x8x8xf32>, vector<1x8x8xf32> -> vector<1x8x8xf32>
    "tpu.trace_stop"() : () -> ()
    %c1 = arith.constant 1 : index
    %c0_26 = arith.constant 0 : index
    %c0_27 = arith.constant 0 : index
    %71 = vector.load %arg4[%c1, %c0_26, %c0_27] : memref<4x8x32xf32, #tpu.memory_space<vmem>>, vector<1x8x32xf32>
    %72 = vector.shape_cast %71 : vector<1x8x32xf32> to vector<8x32xf32>
    "tpu.trace_start"() <{level = 10 : i32, message = "btd,dc->btc"}> : () -> ()
    %cst_28 = arith.constant dense<0.000000e+00> : vector<1x8x32xf32>
    %73 = tpu.matmul %70, %72, %cst_28 {dimension_numbers = #tpu.dot_dimension_numbers<[2], [0], [0, 1], [1], [0, 0, 0, 1, 1, 1], [], []>} : vector<1x8x8xf32>, vector<8x32xf32>, vector<1x8x32xf32> -> vector<1x8x32xf32>
    "tpu.trace_stop"() : () -> ()
    %74 = arith.addf %54, %73 : vector<1x8x32xf32>
    %75 = vector.extract_strided_slice %26 {offsets = [0, 0, 16], sizes = [1, 8, 8], strides = [1, 1, 1]} : vector<1x8x96xf32> to vector<1x8x8xf32>
    %76 = vector.extract_strided_slice %26 {offsets = [0, 0, 48], sizes = [1, 8, 8], strides = [1, 1, 1]} : vector<1x8x96xf32> to vector<1x8x8xf32>
    %77 = vector.extract_strided_slice %26 {offsets = [0, 0, 80], sizes = [1, 8, 8], strides = [1, 1, 1]} : vector<1x8x96xf32> to vector<1x8x8xf32>
    "tpu.trace_start"() <{level = 10 : i32, message = "btd,bsd->bts"}> : () -> ()
    %cst_29 = arith.constant dense<0.000000e+00> : vector<1x8x8xf32>
    %78 = tpu.matmul %75, %76, %cst_29 {dimension_numbers = #tpu.dot_dimension_numbers<[2], [2], [1], [1], [0, 0, 0, 1, 1, 1], [0], [0]>} : vector<1x8x8xf32>, vector<1x8x8xf32>, vector<1x8x8xf32> -> vector<1x8x8xf32>
    "tpu.trace_stop"() : () -> ()
    %79 = arith.addf %78, %33 : vector<1x8x8xf32>
    %cst_30 = arith.constant dense<0xFF800000> : vector<1x8xf32>
    %80 = vector.multi_reduction <maximumf>, %79, %cst_30 [2] : vector<1x8x8xf32> to vector<1x8xf32>
    %81 = vector.shape_cast %80 : vector<1x8xf32> to vector<1x8x1xf32>
    %82 = vector.broadcast %81 : vector<1x8x1xf32> to vector<1x8x8xf32>
    %83 = arith.subf %79, %82 : vector<1x8x8xf32>
    %84 = math.exp %83 : vector<1x8x8xf32>
    %cst_31 = arith.constant dense<0.000000e+00> : vector<1x8xf32>
    %85 = vector.multi_reduction <add>, %84, %cst_31 [2] : vector<1x8x8xf32> to vector<1x8xf32>
    %86 = vector.shape_cast %85 : vector<1x8xf32> to vector<1x8x1xf32>
    %87 = tpu.reciprocal %86 {approx = true} : vector<1x8x1xf32> -> vector<1x8x1xf32>
    %88 = vector.broadcast %87 : vector<1x8x1xf32> to vector<1x8x8xf32>
    %89 = arith.mulf %84, %88 : vector<1x8x8xf32>
    "tpu.trace_start"() <{level = 10 : i32, message = "bts,bsd->btd"}> : () -> ()
    %cst_32 = arith.constant dense<0.000000e+00> : vector<1x8x8xf32>
    %90 = tpu.matmul %89, %77, %cst_32 {dimension_numbers = #tpu.dot_dimension_numbers<[2], [1], [1], [2], [0, 0, 0, 1, 1, 2], [0], [0]>} : vector<1x8x8xf32>, vector<1x8x8xf32>, vector<1x8x8xf32> -> vector<1x8x8xf32>
    "tpu.trace_stop"() : () -> ()
    %c2 = arith.constant 2 : index
    %c0_33 = arith.constant 0 : index
    %c0_34 = arith.constant 0 : index
    %91 = vector.load %arg4[%c2, %c0_33, %c0_34] : memref<4x8x32xf32, #tpu.memory_space<vmem>>, vector<1x8x32xf32>
    %92 = vector.shape_cast %91 : vector<1x8x32xf32> to vector<8x32xf32>
    "tpu.trace_start"() <{level = 10 : i32, message = "btd,dc->btc"}> : () -> ()
    %cst_35 = arith.constant dense<0.000000e+00> : vector<1x8x32xf32>
    %93 = tpu.matmul %90, %92, %cst_35 {dimension_numbers = #tpu.dot_dimension_numbers<[2], [0], [0, 1], [1], [0, 0, 0, 1, 1, 1], [], []>} : vector<1x8x8xf32>, vector<8x32xf32>, vector<1x8x32xf32> -> vector<1x8x32xf32>
    "tpu.trace_stop"() : () -> ()
    %94 = arith.addf %74, %93 : vector<1x8x32xf32>
    %95 = vector.extract_strided_slice %26 {offsets = [0, 0, 24], sizes = [1, 8, 8], strides = [1, 1, 1]} : vector<1x8x96xf32> to vector<1x8x8xf32>
    %96 = vector.extract_strided_slice %26 {offsets = [0, 0, 56], sizes = [1, 8, 8], strides = [1, 1, 1]} : vector<1x8x96xf32> to vector<1x8x8xf32>
    %97 = vector.extract_strided_slice %26 {offsets = [0, 0, 88], sizes = [1, 8, 8], strides = [1, 1, 1]} : vector<1x8x96xf32> to vector<1x8x8xf32>
    "tpu.trace_start"() <{level = 10 : i32, message = "btd,bsd->bts"}> : () -> ()
    %cst_36 = arith.constant dense<0.000000e+00> : vector<1x8x8xf32>
    %98 = tpu.matmul %95, %96, %cst_36 {dimension_numbers = #tpu.dot_dimension_numbers<[2], [2], [1], [1], [0, 0, 0, 1, 1, 1], [0], [0]>} : vector<1x8x8xf32>, vector<1x8x8xf32>, vector<1x8x8xf32> -> vector<1x8x8xf32>
    "tpu.trace_stop"() : () -> ()
    %99 = arith.addf %98, %33 : vector<1x8x8xf32>
    %cst_37 = arith.constant dense<0xFF800000> : vector<1x8xf32>
    %100 = vector.multi_reduction <maximumf>, %99, %cst_37 [2] : vector<1x8x8xf32> to vector<1x8xf32>
    %101 = vector.shape_cast %100 : vector<1x8xf32> to vector<1x8x1xf32>
    %102 = vector.broadcast %101 : vector<1x8x1xf32> to vector<1x8x8xf32>
    %103 = arith.subf %99, %102 : vector<1x8x8xf32>
    %104 = math.exp %103 : vector<1x8x8xf32>
    %cst_38 = arith.constant dense<0.000000e+00> : vector<1x8xf32>
    %105 = vector.multi_reduction <add>, %104, %cst_38 [2] : vector<1x8x8xf32> to vector<1x8xf32>
    %106 = vector.shape_cast %105 : vector<1x8xf32> to vector<1x8x1xf32>
    %107 = tpu.reciprocal %106 {approx = true} : vector<1x8x1xf32> -> vector<1x8x1xf32>
    %108 = vector.broadcast %107 : vector<1x8x1xf32> to vector<1x8x8xf32>
    %109 = arith.mulf %104, %108 : vector<1x8x8xf32>
    "tpu.trace_start"() <{level = 10 : i32, message = "bts,bsd->btd"}> : () -> ()
    %cst_39 = arith.constant dense<0.000000e+00> : vector<1x8x8xf32>
    %110 = tpu.matmul %109, %97, %cst_39 {dimension_numbers = #tpu.dot_dimension_numbers<[2], [1], [1], [2], [0, 0, 0, 1, 1, 2], [0], [0]>} : vector<1x8x8xf32>, vector<1x8x8xf32>, vector<1x8x8xf32> -> vector<1x8x8xf32>
    "tpu.trace_stop"() : () -> ()
    %c3 = arith.constant 3 : index
    %c0_40 = arith.constant 0 : index
    %c0_41 = arith.constant 0 : index
    %111 = vector.load %arg4[%c3, %c0_40, %c0_41] : memref<4x8x32xf32, #tpu.memory_space<vmem>>, vector<1x8x32xf32>
    %112 = vector.shape_cast %111 : vector<1x8x32xf32> to vector<8x32xf32>
    "tpu.trace_start"() <{level = 10 : i32, message = "btd,dc->btc"}> : () -> ()
    %cst_42 = arith.constant dense<0.000000e+00> : vector<1x8x32xf32>
    %113 = tpu.matmul %110, %112, %cst_42 {dimension_numbers = #tpu.dot_dimension_numbers<[2], [0], [0, 1], [1], [0, 0, 0, 1, 1, 1], [], []>} : vector<1x8x8xf32>, vector<8x32xf32>, vector<1x8x32xf32> -> vector<1x8x32xf32>
    "tpu.trace_stop"() : () -> ()
    %114 = arith.addf %94, %113 : vector<1x8x32xf32>
    %115 = arith.addf %0, %114 : vector<1x8x32xf32>
    %c0_43 = arith.constant 0 : index
    %c0_44 = arith.constant 0 : index
    %116 = vector.load %arg5[%c0_43, %c0_44] : memref<1x32xf32, #tpu.memory_space<vmem>>, vector<1x32xf32>
    %117 = vector.shape_cast %116 : vector<1x32xf32> to vector<1x1x32xf32>
    %118 = vector.broadcast %117 : vector<1x1x32xf32> to vector<1x8x32xf32>
    %119 = arith.addf %115, %118 : vector<1x8x32xf32>
    %cst_45 = arith.constant dense<0.000000e+00> : vector<1x8xf32>
    %120 = vector.multi_reduction <add>, %119, %cst_45 [2] : vector<1x8x32xf32> to vector<1x8xf32>
    %121 = vector.shape_cast %120 : vector<1x8xf32> to vector<1x8x1xf32>
    %cst_46 = arith.constant 3.200000e+01 : f32
    %122 = vector.broadcast %cst_46 : f32 to vector<1x8x1xf32>
    %123 = arith.divf %121, %122 : vector<1x8x1xf32>
    %124 = vector.broadcast %123 : vector<1x8x1xf32> to vector<1x8x32xf32>
    %125 = arith.subf %119, %124 : vector<1x8x32xf32>
    %126 = vector.broadcast %123 : vector<1x8x1xf32> to vector<1x8x32xf32>
    %127 = arith.subf %119, %126 : vector<1x8x32xf32>
    %128 = arith.mulf %125, %127 : vector<1x8x32xf32>
    %cst_47 = arith.constant dense<0.000000e+00> : vector<1x8xf32>
    %129 = vector.multi_reduction <add>, %128, %cst_47 [2] : vector<1x8x32xf32> to vector<1x8xf32>
    %130 = vector.shape_cast %129 : vector<1x8xf32> to vector<1x8x1xf32>
    %cst_48 = arith.constant 3.200000e+01 : f32
    %131 = vector.broadcast %cst_48 : f32 to vector<1x8x1xf32>
    %132 = arith.divf %130, %131 : vector<1x8x1xf32>
    %133 = vector.broadcast %123 : vector<1x8x1xf32> to vector<1x8x32xf32>
    %134 = arith.subf %119, %133 : vector<1x8x32xf32>
    %cst_49 = arith.constant 9.99999974E-6 : f32
    %135 = vector.broadcast %cst_49 : f32 to vector<1x8x1xf32>
    %136 = arith.addf %132, %135 : vector<1x8x1xf32>
    %137 = math.rsqrt %136 : vector<1x8x1xf32>
    %138 = vector.broadcast %137 : vector<1x8x1xf32> to vector<1x8x32xf32>
    %139 = arith.mulf %134, %138 : vector<1x8x32xf32>
    %c0_50 = arith.constant 0 : index
    %c0_51 = arith.constant 0 : index
    %140 = vector.load %arg6[%c0_50, %c0_51] : memref<32x128xf32, #tpu.memory_space<vmem>>, vector<32x128xf32>
    "tpu.trace_start"() <{level = 10 : i32, message = "btc,cd->btd"}> : () -> ()
    %cst_52 = arith.constant dense<0.000000e+00> : vector<1x8x128xf32>
    %141 = tpu.matmul %139, %140, %cst_52 {dimension_numbers = #tpu.dot_dimension_numbers<[2], [0], [0, 1], [1], [0, 0, 0, 1, 1, 1], [], []>} : vector<1x8x32xf32>, vector<32x128xf32>, vector<1x8x128xf32> -> vector<1x8x128xf32>
    "tpu.trace_stop"() : () -> ()
    %c0_53 = arith.constant 0 : index
    %c0_54 = arith.constant 0 : index
    %142 = vector.load %arg7[%c0_53, %c0_54] : memref<1x128xf32, #tpu.memory_space<vmem>>, vector<1x128xf32>
    %143 = vector.shape_cast %142 : vector<1x128xf32> to vector<1x1x128xf32>
    %144 = vector.broadcast %143 : vector<1x1x128xf32> to vector<1x8x128xf32>
    %145 = arith.addf %141, %144 : vector<1x8x128xf32>
    %cst_55 = arith.constant 0.000000e+00 : f32
    %146 = vector.broadcast %cst_55 : f32 to vector<1x8x128xf32>
    %147 = arith.maximumf %145, %146 : vector<1x8x128xf32>
    %c0_56 = arith.constant 0 : index
    %c0_57 = arith.constant 0 : index
    %148 = vector.load %arg8[%c0_56, %c0_57] : memref<128x32xf32, #tpu.memory_space<vmem>>, vector<128x32xf32>
    "tpu.trace_start"() <{level = 10 : i32, message = "btd,dc->btc"}> : () -> ()
    %cst_58 = arith.constant dense<0.000000e+00> : vector<1x8x32xf32>
    %149 = tpu.matmul %147, %148, %cst_58 {dimension_numbers = #tpu.dot_dimension_numbers<[2], [0], [0, 1], [1], [0, 0, 0, 1, 1, 1], [], []>} : vector<1x8x128xf32>, vector<128x32xf32>, vector<1x8x32xf32> -> vector<1x8x32xf32>
    "tpu.trace_stop"() : () -> ()
    %c0_59 = arith.constant 0 : index
    %c0_60 = arith.constant 0 : index
    %150 = vector.load %arg9[%c0_59, %c0_60] : memref<1x32xf32, #tpu.memory_space<vmem>>, vector<1x32xf32>
    %151 = vector.shape_cast %150 : vector<1x32xf32> to vector<1x1x32xf32>
    %152 = vector.broadcast %151 : vector<1x1x32xf32> to vector<1x8x32xf32>
    %153 = arith.addf %149, %152 : vector<1x8x32xf32>
    %154 = arith.addf %119, %153 : vector<1x8x32xf32>
    %c0_61 = arith.constant 0 : index
    %c0_62 = arith.constant 0 : index
    %c0_63 = arith.constant 0 : index
    %155 = vector.load %arg10[%c0_61, %c0_62, %c0_63] : memref<1x8x32xf32, #tpu.memory_space<vmem>>, vector<1x8x32xf32>
    tpu.vector_store %arg10[%c0_61, %c0_62, %c0_63], %154 {strides = array<i32>} : memref<1x8x32xf32, #tpu.memory_space<vmem>>, vector<1x8x32xf32>,
    return
  }
  func.func @transform_0(%arg0: i32) -> (i32, i32, i32) {
    %c0_i32 = arith.constant 0 : i32
    %c0_i32_0 = arith.constant 0 : i32
    %c0_i32_1 = arith.constant 0 : i32
    return %arg0, %c0_i32, %c0_i32_0 : i32, i32, i32
  }
  func.func @transform_1(%arg0: i32) -> (i32, i32) {
    %c0_i32 = arith.constant 0 : i32
    %c0_i32_0 = arith.constant 0 : i32
    %c0_i32_1 = arith.constant 0 : i32
    return %c0_i32, %c0_i32_0 : i32, i32
  }
  func.func @transform_2(%arg0: i32) -> (i32, i32) {
    %c0_i32 = arith.constant 0 : i32
    %c0_i32_0 = arith.constant 0 : i32
    %c0_i32_1 = arith.constant 0 : i32
    return %c0_i32, %c0_i32_0 : i32, i32
  }
  func.func @transform_3(%arg0: i32) -> (i32, i32, i32) {
    %c0_i32 = arith.constant 0 : i32
    %c0_i32_0 = arith.constant 0 : i32
    %c0_i32_1 = arith.constant 0 : i32
    %c0_i32_2 = arith.constant 0 : i32
    return %c0_i32, %c0_i32_0, %c0_i32_1 : i32, i32, i32
  }
  func.func @transform_4(%arg0: i32) -> (i32, i32) {
    %c0_i32 = arith.constant 0 : i32
    %c0_i32_0 = arith.constant 0 : i32
    %c0_i32_1 = arith.constant 0 : i32
    return %c0_i32, %c0_i32_0 : i32, i32
  }
  func.func @transform_5(%arg0: i32) -> (i32, i32) {
    %c0_i32 = arith.constant 0 : i32
    %c0_i32_0 = arith.constant 0 : i32
    %c0_i32_1 = arith.constant 0 : i32
    return %c0_i32, %c0_i32_0 : i32, i32
  }
  func.func @transform_6(%arg0: i32) -> (i32, i32) {
    %c0_i32 = arith.constant 0 : i32
    %c0_i32_0 = arith.constant 0 : i32
    %c0_i32_1 = arith.constant 0 : i32
    return %c0_i32, %c0_i32_0 : i32, i32
  }
  func.func @transform_7(%arg0: i32) -> (i32, i32) {
    %c0_i32 = arith.constant 0 : i32
    %c0_i32_0 = arith.constant 0 : i32
    %c0_i32_1 = arith.constant 0 : i32
    return %c0_i32, %c0_i32_0 : i32, i32
  }
  func.func @transform_8(%arg0: i32) -> (i32, i32) {
    %c0_i32 = arith.constant 0 : i32
    %c0_i32_0 = arith.constant 0 : i32
    %c0_i32_1 = arith.constant 0 : i32
    return %c0_i32, %c0_i32_0 : i32, i32
  }
  func.func @transform_9(%arg0: i32) -> (i32, i32, i32) {
    %c0_i32 = arith.constant 0 : i32
    %c0_i32_0 = arith.constant 0 : i32
    %c0_i32_1 = arith.constant 0 : i32
    return %arg0, %c0_i32, %c0_i32_0 : i32, i32, i32
  }
}

</mosaic_0001>

<bundles_post_ra>
// kernel: block_forward.1
= control target key start
LH: loop header
LB: loop body
LE: loop exit
PB: predicated region body
PF: predicated region fallthrough
CT: control target
= control target key end

     0   :  { %14 = vsyncpa [#allocation3], 0  ;;  %s1418_s0 = inlined_call_operand.vmem [shape: f32[2,8,32], index: 0, kind: input, shape index: {}]   ;;  %s1419_s1 = inlined_call_operand.vmem [shape: f32[32,96], index: 1, kind: input, shape index: {}]   ;;  %s1420_s2 = inlined_call_operand.vmem [shape: f32[1,96], index: 2, kind: input, shape index: {}]   ;;  %s1421_s3 = inlined_call_operand.vmem [shape: f32[4,8,32], index: 3, kind: input, shape index: {}]   ;;  %s1422_s4 = inlined_call_operand.vmem [shape: f32[1,32], index: 4, kind: input, shape index: {}]   ;;  %s1423_s5 = inlined_call_operand.vmem [shape: f32[32,128], index: 5, kind: input, shape index: {}]   ;;  %s1424_s6 = inlined_call_operand.vmem [shape: f32[1,128], index: 6, kind: input, shape index: {}]   ;;  %s1425_s7 = inlined_call_operand.vmem [shape: f32[128,32], index: 7, kind: input, shape index: {}]   ;;  %s1426_s8 = inlined_call_operand.vmem [shape: f32[1,32], index: 8, kind: input, shape index: {}]   ;;  %s1427_s9 = inlined_call_operand.hbm [shape: f32[2,8,32], index: 9, kind: output, shape index: {}]  }
   0x1   :  { %16 = vsyncpa [#allocation3 + $0x1], 0  ;;  %s1170_s30 = smov 0   ;;  %s1172_s10 = smov 0  }
   0x2   :  { %s1174_s11 = smov 0   ;;  %s1176_s12 = smov 0  }
   0x3 LB: > { %s1191_s13 = sadd.s32 4294967295, %s1105_s12   ;;  %s934_s14 = sadd.s32 4294967294, %s1105_s12   ;;  %s1105_s12 = sphi %s1176_s12, %s1433_s12   ;;  %s1101_s11 = sphi %s1174_s11, %s1432_s11   ;;  %s1097_s10 = sphi %s1172_s10, %s1431_s10   ;;  %s1093_s30 = sphi %s1170_s30, %s1430_s30  }
   0x4   : > { %s1195_s15 = sadd.s32 1, %s1105_s12   ;;  %s223_s16 = sadd.s32 1, %s1101_s11 }
   0x5   : > { %s220_s17 = ssub.s32 %s1105_s12, %s1195_s15  ;;  %p233_p0 = scmp.ne.s32.totalorder %s1101_s11, %s1097_s10 }
   0x6   : > { %p221_p1 = scmp.eq.s32.totalorder %s220_s17, 0  ;;  %p234_p2 = scmp.eq.s32.totalorder %s1191_s13, 1 }
   0x7   : > { %p239_p3 = scmp.ne.s32.totalorder %s1097_s10, %s1093_s30  ;;  %p240_p4 = scmp.eq.s32.totalorder %s934_s14, 1 }
   0x8   : > { %s1206_s18 = scalar_select %p221_p1, %s1101_s11, %s223_s16  }
   0x9   : > { %p1208_p5 = por %p234_p2, %p233_p0  ;;  %p1212_p6 = por %p240_p4, %p239_p3 }
   0xa   : > { %p937_p7 = scmp.ge.s32.totalorder %s1105_s12, 1  ;;  %p289_p8 = scmp.lt.s32.totalorder %s1105_s12, 3 }
   0xc   : > { %p290_p9 = pnand %p937_p7, %p289_p8 }
   0xd   : > { %p324_p10 = scmp.lt.s32.totalorder (!%p290_p9), %s1191_s13, 1  ;;  %s1108_s24 = smov (!%p290_p9), 112  }
   0xe   : > { %293 = sbr.rel (%p290_p9) target bundleno = 2150 (0x866), region = 56  ;;  %s1110_s26 = smov (!%p290_p9), 96  }
   0xf   : > { %s1111_s27 = smov (!%p290_p9), 80   ;;  %s1112_s28 = smov (!%p290_p9), 88  }
  0x10   : > { %s1114_s29 = smov (!%p290_p9), 64   ;;  %s1115_s14 = smov (!%p290_p9), 48  }
  0x11   : > { %s1116_s16 = smov (!%p290_p9), 72   ;;  %s1117_s17 = smov (!%p290_p9), 104  }
  0x13   : > { %s325_s21 = scalar_select %p324_p10, %s1191_s13, 1  ;;  %vm329_vm0 = vcmask 261120   ;;  %v1107_v2 = vmov 32.0   ;;  %v362_v14 = vld [vmem:[%s1419_s1 + $0x18] sm:$0xff]  ;;  %v361_v15 = vld [vmem:[%s1419_s1 + $0x10] sm:$0xff]  ;;  %v360_v16 = vld [vmem:[%s1419_s1 + $0x8] sm:$0xff]  ;;  %v390_v37 = vlaneseq }
  0x14   : > { %1021 = vrcp.f32 %v1107_v2  ;;  %382 = vmatpush.msra.mxu0 %v362_v14  ;;  %v359_v17 = vld [vmem:[%s1419_s1] sm:$0xff]  ;;  %vm399_vm5 = vcmask 64512   ;;  %v1113_v40 = vmov -1e+30  }
  0x15   : > { %s939_s22 = sshll.u32 %s325_s21, 3  ;;  %v1017_v29 = vld [vmem:[%s1420_s2] ss:$0 sm:$0xff]  ;;  %v391_v38 = vshrl.u32 %v390_v37, 7  ;;  %v393_v39 = vand.u32 127, %v390_v37  ;;  %s1118_s21 = smov 40  }
  0x16   : > { %s327_s25 = scalar_lea.vmem %s1418_s0, %s939_s22  ;;  %383 = vmatpush.msra.mxu0 %v361_v15  ;;  %s1119_s22 = smov 56  }
  0x17   : > { %v1223_v0 = vld [vmem:[%s327_s25] sm:$0xff]  ;;  %s1109_s25 = smov 120   ;;  %vm394_vm6 = vcmp.ge.s32.totalorder %v391_v38, %v393_v39 }
  0x18   : > { %v330_v1 = vsel %vm329_vm0, %v1223_v0, 0.0  ;;  %384 = vmatpush.msra.mxu0 %v360_v16  ;;  %v1263_v41 = vsel %vm394_vm6, 0.0, %v1113_v40 }
  0x19   : > { %331 = vadd.xlane.f32.xlu0 %v330_v1 }
  0x1a   : > { %v1022_v3 = vpop.eup %1021  ;;  %385 = vmatpush.msra.mxu0 %v359_v17 }
  0x1b   : > { %v334_v4 = vmul.f32 32.0, %v1022_v3  ;;  %vm338_vm1 = vweird.f32 %v1022_v3 }
  0x1d   : > { %v335_v5 = vsub.f32 1.0, %v334_v4 }
  0x1f   : > { %v336_v6 = vmul.f32 %v1022_v3, %v335_v5 }
  0x21   : > { %v337_v7 = vadd.f32 %v1022_v3, %v336_v6 }
  0x23   : > { %v1227_v8 = vsel %vm338_vm1, %v1022_v3, %v337_v7 }
  0x8c   : > { %v332_v9 = vpop.xlane.xlu0 %331 }
  0x8d   : > { %v340_v10 = vmul.f32 %v1227_v8, %v332_v9 }
  0x8f   : > { %v341_v11 = vsub.f32 %v1223_v0, %v340_v10 }
  0x91   : > { %v342_v12 = vmul.f32 %v341_v11, %v341_v11 }
  0x93   : > { %v343_v13 = vsel %vm329_vm0, %v342_v12, 0.0 }
  0x94   : > { %344 = vadd.xlane.f32.xlu0 %v343_v13 }
 0x107   : > { %v345_v18 = vpop.xlane.xlu0 %344 }
 0x108   : > { %v346_v19 = vmul.f32 %v345_v18, %v1227_v8 }
 0x10a   : > { %v347_v20 = vadd.f32 1e-05, %v346_v19  ;;  %v461_v19 = vld [vmem:[%s1421_s3] sm:$0xff] }
 0x10b   : > { %570 = vmatpush.msra.mxu3 %v461_v19  ;;  %v818_v19 = vld [vmem:[%s1425_s7 + $0x8] sm:$0xff] }
 0x10c   : > { %1023 = vrsqrt.f32 %v347_v20  ;;  %vm354_vm3 = vweird.f32 %v347_v20 }
 0x112   : > { %v1024_v21 = vpop.eup %1023 }
 0x113   : > { %v349_v22 = vmul.f32 %v1024_v21, %v347_v20  ;;  %vm355_vm2 = vweird.f32 %v1024_v21 }
 0x114   : > { %vm356_vm4 = vmor %vm354_vm3, %vm355_vm2 }
 0x115   : > { %v350_v23 = vmul.f32 %v1024_v21, %v349_v22  ;;  %v953_v22 = vld [vmem:[%s1421_s3 + $0x10] sm:$0xff] }
 0x117   : > { %v351_v24 = vmul.f32 0.5, %v350_v23 }
 0x119   : > { %v352_v25 = vsub.f32 1.5, %v351_v24 }
 0x11b   : > { %v353_v26 = vmul.f32 %v1024_v21, %v352_v25 }
 0x11d   : > { %v357_v27 = vsel %vm356_vm4, %v1024_v21, %v353_v26  ;;  %v947_v21 = vld [vmem:[%s1421_s3 + $0x8] sm:$0xff] }
 0x11e   : > { %v358_v28 = vmul.f32 %v357_v27, %v341_v11 }
 0x120   : > { %940 = vmatmul.msk.f32.vlgmr.msra.gmra.mxu0 %vm329_vm0, %v358_v28 }
 0x19d   : > { %v387_v30 = vpop.f32.mrf.mxu0 }
 0x19e   : > { %v1249_v31 = vadd.f32 %v1017_v29, %v387_v30 }
 0x1a0   : > { %575 = vrot.lane.b32.xlu0 %v1249_v31, %s1108_s24  ;;  %462 = vrot.lane.b32.xlu2 %v1249_v31, %s1109_s25 }
 0x1a1   : > { %397 = vrot.lane.b32.xlu1 %v1249_v31, %s1110_s26 }
 0x1a8   : > { %577 = vrot.lane.b32.xlu2 %v1249_v31, %s1111_s27  ;;  %s321_s27 = sand.u32 1, %s1097_s10  }
 0x1a9   : > { %464 = vrot.lane.b32.xlu1 %v1249_v31, %s1112_s28  ;;  %s938_s28 = sshll.u32 %s321_s27, 3 }
 0x1aa   : > { %s323_s23 = scalar_lea.vmem [#allocation2], %s938_s28  ;;  %s1063_s28 = scalar_lea.hbm %s1427_s9, 16 }
 0x1ab   : > { %s872_s24 = sshll.u32 %s323_s23, 4  ;;  %s873_s24 = int_to_ptr.vmem [resolvable:$true] %s872_s24 }
 0x1fa   : > { %v463_v32 = vpop.permute.xlu2 %462 }
 0x202   : > { %v578_v35 = vpop.permute.xlu2 %577 }
 0x212   : > { %v576_v36 = vpop.permute.xlu0 %575 }
 0x213   : > { %v398_v33 = vpop.permute.xlu1 %397 }
 0x214   : > { %941 = vmatpush.xpose.msk.msra.mxu1 %vm399_vm5, %v398_v33 }
 0x217   : > { %942 = vmatmul.msk.f32.vlgmr.msra.gmra.mxu1 %vm399_vm5, %v1249_v31 }
 0x218   : > { %547 = vmatpush.msrb.mxu1 %v947_v21  ;;  %v1019_v21 = vld [vmem:[%s1424_s6] ss:$0 sm:$0xff] }
 0x21a   : > { %660 = vmatpush.msra.mxu1 %v953_v22 }
 0x21b   : > { %v465_v34 = vpop.permute.xlu1 %464 }
 0x21c   : > { %944 = vmatpush.xpose.msk.msrb.mxu0 %vm399_vm5, %v465_v34 }
 0x21f   : > { %945 = vmatmul.msk.f32.vlgmr.msrb.gmra.mxu0 %vm399_vm5, %v463_v32 }
 0x220   : > { %950 = vmatpush.xpose.msk.msra.mxu0 %vm399_vm5, %v578_v35 }
 0x227   : > { %951 = vmatmul.msk.f32.vlgmr.msra.gmra.mxu0 %vm399_vm5, %v576_v36  ;;  %v958_v36 = vld [vmem:[%s1421_s3 + $0x18] sm:$0xff] }
 0x294   : > { %v421_v42 = vpop.f32.mrf.mxu1 }
 0x295   : > { %v422_v43 = vadd.f32 %v421_v42, %v1263_v41 }
 0x297   : > { %v424_v44 = vsel %vm399_vm5, %v422_v43, -inf }
 0x298   : > { %425 = vmax.xlane.f32.xlu1 %v424_v44 }
 0x29c   : > { %v487_v45 = vpop.f32.mrf.mxu0 }
 0x29d   : > { %v488_v46 = vadd.f32 %v487_v45, %v1263_v41  ;;  %v1018_v45 = vld [vmem:[%s1422_s4] ss:$0 sm:$0xff] }
 0x29f   : > { %v490_v47 = vsel %vm399_vm5, %v488_v46, -inf }
 0x2a0   : > { %491 = vmax.xlane.f32.xlu2 %v490_v47 }
 0x2a4   : > { %v600_v48 = vpop.f32.mrf.mxu0 }
 0x2a5   : > { %v601_v49 = vadd.f32 %v600_v48, %v1263_v41 }
 0x2a7   : > { %v603_v50 = vsel %vm399_vm5, %v601_v49, -inf }
 0x2a8   : > { %604 = vmax.xlane.f32.xlu0 %v603_v50 }
 0x2b8   : > { %435 = vrot.lane.b32.xlu2 %v1249_v31, %s1114_s29  ;;  %s962_s29 = sshll.u32 %s1191_s13, 3  ;;  %s860_s13 = scalar_lea.sflag [#allocation3], %s321_s27 }
 0x2bc   : > { %614 = vrot.lane.b32.xlu0 %v1249_v31, %s1115_s14 }
 0x30b   : > { %v426_v51 = vpop.xlane.xlu1 %425 }
 0x30c   : > { %v427_v52 = vsub.f32 %v422_v43, %v426_v51 }
 0x30e   : > { %v428_v53 = vmul.f32 1.442695, %v427_v52 }
 0x310   : > { %1025 = vpow2.f32 %v428_v53 }
 0x313   : > { %v492_v54 = vpop.xlane.xlu2 %491 }
 0x314   : > { %v493_v55 = vsub.f32 %v488_v46, %v492_v54  ;;  %v788_v54 = vld [vmem:[%s1423_s5 + $0x18] sm:$0xff] }
 0x316   : > { %v1026_v56 = vpop.eup %1025  ;;  %v494_v57 = vmul.f32 1.442695, %v493_v55  ;;  %v786_v55 = vld [vmem:[%s1423_s5 + $0x8] sm:$0xff] }
 0x317   : > { %v430_v58 = vsel %vm399_vm5, %v1026_v56, 0.0 }
 0x318   : > { %1027 = vpow2.f32 %v494_v57  ;;  %431 = vadd.xlane.f32.xlu2 %v430_v58  ;;  %v832_v57 = vld [vmem:[%s1425_s7 + $0x78] sm:$0xff]  ;;  %v831_v58 = vld [vmem:[%s1425_s7 + $0x70] sm:$0xff] }
 0x319   : > { %837 = vmatpush.msrb.mxu3 %v832_v57 }
 0x31b   : > { %v605_v59 = vpop.xlane.xlu0 %604  ;;  %v436_v60 = vpop.permute.xlu2 %435  ;;  %838 = vmatpush.msrb.mxu3 %v831_v58 }
 0x31c   : > { %v606_v61 = vsub.f32 %v601_v49, %v605_v59  ;;  %456 = vmatpush.msra.mxu2 %v436_v60  ;;  %v830_v59 = vld [vmem:[%s1425_s7 + $0x68] sm:$0xff]  ;;  %v829_v60 = vld [vmem:[%s1425_s7 + $0x60] sm:$0xff] }
 0x31d   : > { %839 = vmatpush.msrb.mxu3 %v830_v59 }
 0x31e   : > { %v1028_v62 = vpop.eup %1027  ;;  %v607_v63 = vmul.f32 1.442695, %v606_v61  ;;  %v828_v61 = vld [vmem:[%s1425_s7 + $0x58] sm:$0xff] }
 0x31f   : > { %v496_v1 = vsel %vm399_vm5, %v1028_v62, 0.0  ;;  %840 = vmatpush.msrb.mxu3 %v829_v60 }
 0x320   : > { %1029 = vpow2.f32 %v607_v63  ;;  %497 = vadd.xlane.f32.xlu1 %v496_v1  ;;  %v827_v1 = vld [vmem:[%s1425_s7 + $0x50] sm:$0xff] }
 0x321   : > { %841 = vmatpush.msrb.mxu3 %v828_v61 }
 0x323   : > { %842 = vmatpush.msrb.mxu3 %v827_v1 }
 0x326   : > { %v1030_v2 = vpop.eup %1029 }
 0x327   : > { %v609_v3 = vsel %vm399_vm5, %v1030_v2, 0.0 }
 0x328   : > { %610 = vadd.xlane.f32.xlu1 %v609_v3  ;;  %v826_v3 = vld [vmem:[%s1425_s7 + $0x48] sm:$0xff] }
 0x329   : > { %843 = vmatpush.msrb.mxu3 %v826_v3 }
 0x32e   : > { %v615_v16 = vpop.permute.xlu0 %614 }
 0x330   : > { %668 = vrot.lane.b32.xlu2 %v1249_v31, %s1116_s16 }
 0x338   : > { %666 = vrot.lane.b32.xlu2 %v1249_v31, %s1117_s17 }
 0x340   : > { %705 = vrot.lane.b32.xlu2 %v1249_v31, %s1118_s21 }
 0x341   : > { %501 = vrot.lane.b32.xlu1 %v1249_v31, %s1119_s22  ;;  %s870_s22 = scalar_lea.hbm %s1427_s9, %s962_s29 }
 0x342   : > { %s874_s25 = sshll.u32 %s870_s22, 4  ;;  %s875_s25 = int_to_ptr.hbm [resolvable:$true] %s874_s25 }
 0x343   : > { %s1057_s26 = sshra.s32 %s875_s25, 4  ;;  %s1058_s26 = int_to_ptr.hbm [resolvable:$true] %s1057_s26 }
 0x344   : > { %s1059_s14 = scalar_lea.hbm %s1058_s26, 8  ;;  %p1064_p0 = scmp.lt.s32.totalorder %s1058_s26, %s1427_s9 }
 0x345   : > { %p1060_p11 = scmp.ne.s32.totalorder %s1058_s26, %s1059_s14  ;;  %p1065_p1 = scmp.lt.s32.totalorder %s1063_s28, %s1059_s14 }
 0x347   : > { %p1061_p12 = pnand %p1060_p11, %p1208_p5  ;;  %p1066_p2 = por %p1065_p1, %p1064_p0 }
 0x349   : > { %p1062_p13 = pneg %p1061_p12 }
 0x34b   : > { %p1067_p3 = pnand %p1066_p2, %p1062_p13 }
 0x38b   : > { %v432_v4 = vpop.xlane.xlu2 %431 }
 0x38c   : > { %1031 = vrcp.f32 %v432_v4  ;;  %v825_v4 = vld [vmem:[%s1425_s7 + $0x40] sm:$0xff] }
 0x38d   : > { %844 = vmatpush.msrb.mxu3 %v825_v4 }
 0x392   : > { %v1032_v5 = vpop.eup %1031 }
 0x393   : > { %v669_v6 = vpop.permute.xlu2 %668  ;;  %v434_v7 = vmul.f32 %v1032_v5, %v1026_v56  ;;  %v498_v10 = vpop.xlane.xlu1 %497  ;;  %v785_v56 = vld [vmem:[%s1423_s5] sm:$0xff]  ;;  %v823_v5 = vld [vmem:[%s1425_s7 + $0x30] sm:$0xff] }
 0x394   : > { %1033 = vrcp.f32 %v498_v10  ;;  %v821_v10 = vld [vmem:[%s1425_s7 + $0x20] sm:$0xff] }
 0x395   : > { %943 = vmatmul.msk.f32.vlgmr.msra.gmra.mxu2 %vm399_vm5, %v434_v7  ;;  %v822_v7 = vld [vmem:[%s1425_s7 + $0x28] sm:$0xff] }
 0x39a   : > { %v1034_v13 = vpop.eup %1033 }
 0x39b   : > { %v667_v9 = vpop.permute.xlu2 %666  ;;  %v611_v12 = vpop.xlane.xlu1 %610  ;;  %v500_v15 = vmul.f32 %v1034_v13, %v1028_v62 }
 0x39c   : > { %1035 = vrcp.f32 %v611_v12  ;;  %v820_v12 = vld [vmem:[%s1425_s7 + $0x18] sm:$0xff] }
 0x3a2   : > { %v1036_v17 = vpop.eup %1035 }
 0x3a3   : > { %v706_v11 = vpop.permute.xlu2 %705  ;;  %v613_v18 = vmul.f32 %v1036_v17, %v1030_v2 }
 0x3a4   : > { %726 = vmatpush.msrb.mxu0 %v706_v11 }
 0x3b3   : > { %v502_v14 = vpop.permute.xlu1 %501 }
 0x3b4   : > { %522 = vmatpush.msrb.mxu2 %v502_v14 }
 0x3b5   : > { %946 = vmatmul.msk.f32.vlgmr.msrb.gmra.mxu2 %vm399_vm5, %v500_v15 }
 0x3b6   : > { %635 = vmatpush.msra.mxu2 %v615_v16 }
 0x3b8   : > { %955 = vmatpush.xpose.msk.msrb.mxu2 %vm399_vm5, %v669_v6 }
 0x3bd   : > { %952 = vmatmul.msk.f32.vlgmr.msra.gmra.mxu2 %vm399_vm5, %v613_v18  ;;  %v819_v18 = vld [vmem:[%s1425_s7 + $0x10] sm:$0xff] }
 0x3be   : > { %751 = vmatpush.msra.mxu2 %v958_v36 }
 0x3c5   : > { %956 = vmatmul.msk.f32.vlgmr.msrb.gmra.mxu2 %vm399_vm5, %v667_v9 }
 0x418   : > { %v458_v20 = vpop.f32.mrf.mxu2 }
 0x419   : > { %949 = vmatmul.msk.f32.vlgmr.msra.gmra.mxu3 %vm399_vm5, %v458_v20  ;;  %v817_v20 = vld [vmem:[%s1425_s7] sm:$0xff] }
 0x438   : > { %v524_v23 = vpop.f32.mrf.mxu2 }
 0x439   : > { %948 = vmatmul.msk.f32.vlgmr.msrb.gmra.mxu1 %vm399_vm5, %v524_v23 }
 0x43a   : > { %808 = vmatpush.msrb.mxu1 %v788_v54 }
 0x440   : > { %v637_v24 = vpop.f32.mrf.mxu2 }
 0x441   : > { %954 = vmatmul.msk.f32.vlgmr.msra.gmra.mxu1 %vm399_vm5, %v637_v24 }
 0x448   : > { %v691_v25 = vpop.f32.mrf.mxu2 }
 0x449   : > { %v692_v26 = vadd.f32 %v691_v25, %v1263_v41  ;;  %v1020_v25 = vld [vmem:[%s1426_s8] ss:$0 sm:$0xff] }
 0x44b   : > { %v694_v27 = vsel %vm399_vm5, %v692_v26, -inf }
 0x44c   : > { %695 = vmax.xlane.f32.xlu0 %v694_v27 }
 0x49c   : > { %v572_v39 = vpop.f32.mrf.mxu3 }
 0x4b6   : > { %v549_v38 = vpop.f32.mrf.mxu1 }
 0x4b7   : > { %v573_v41 = vadd.f32 %v572_v39, %v549_v38 }
 0x4be   : > { %v662_v40 = vpop.f32.mrf.mxu1 }
 0x4bf   : > { %v696_v28 = vpop.xlane.xlu0 %695  ;;  %v665_v42 = vadd.f32 %v662_v40, %v573_v41 }
 0x4c0   : > { %v697_v29 = vsub.f32 %v692_v26, %v696_v28 }
 0x4c2   : > { %v698_v30 = vmul.f32 1.442695, %v697_v29 }
 0x4c4   : > { %1037 = vpow2.f32 %v698_v30 }
 0x4ca   : > { %v1038_v31 = vpop.eup %1037 }
 0x4cb   : > { %v700_v32 = vsel %vm399_vm5, %v1038_v31, 0.0 }
 0x4cc   : > { %701 = vadd.xlane.f32.xlu1 %v700_v32 }
 0x53f   : > { %v702_v33 = vpop.xlane.xlu1 %701 }
 0x540   : > { %1039 = vrcp.f32 %v702_v33 }
 0x546   : > { %v1040_v34 = vpop.eup %1039 }
 0x547   : > { %v704_v35 = vmul.f32 %v1040_v34, %v1038_v31 }
 0x549   : > { %957 = vmatmul.msk.f32.vlgmr.msrb.gmra.mxu0 %vm399_vm5, %v704_v35 }
 0x5c6   : > { %v728_v37 = vpop.f32.mrf.mxu0 }
 0x5c7   : > { %959 = vmatmul.msk.f32.vlgmr.msra.gmra.mxu2 %vm399_vm5, %v728_v37 }
 0x64a   : > { %v753_v43 = vpop.f32.mrf.mxu2 }
 0x64b   : > { %v756_v44 = vadd.f32 %v753_v43, %v665_v42 }
 0x64d   : > { %v757_v46 = vadd.f32 %v756_v44, %v1223_v0  ;;  %v787_v0 = vld [vmem:[%s1423_s5 + $0x10] sm:$0xff] }
 0x64e   : > { %809 = vmatpush.msrb.mxu1 %v787_v0 }
 0x64f   : > { %v1309_v47 = vadd.f32 %v1018_v45, %v757_v46 }
 0x650   : > { %810 = vmatpush.msrb.mxu1 %v786_v55 }
 0x651   : > { %v763_v48 = vsel %vm329_vm0, %v1309_v47, 0.0 }
 0x652   : > { %764 = vadd.xlane.f32.xlu2 %v763_v48  ;;  %811 = vmatpush.msrb.mxu1 %v785_v56 }
 0x6c5   : > { %v765_v49 = vpop.xlane.xlu2 %764 }
 0x6c6   : > { %v766_v50 = vmul.f32 %v765_v49, %v1227_v8 }
 0x6c8   : > { %v767_v51 = vsub.f32 %v1309_v47, %v766_v50 }
 0x6ca   : > { %v768_v52 = vmul.f32 %v767_v51, %v767_v51 }
 0x6cc   : > { %v769_v53 = vsel %vm329_vm0, %v768_v52, 0.0 }
 0x6cd   : > { %770 = vadd.xlane.f32.xlu0 %v769_v53 }
 0x740   : > { %v771_v62 = vpop.xlane.xlu0 %770 }
 0x741   : > { %v772_v63 = vmul.f32 %v771_v62, %v1227_v8  ;;  %v824_v8 = vld [vmem:[%s1425_s7 + $0x38] sm:$0xff] }
 0x742   : > { %845 = vmatpush.msrb.mxu3 %v824_v8 }
 0x743   : > { %v773_v2 = vadd.f32 1e-05, %v772_v63 }
 0x744   : > { %846 = vmatpush.msrb.mxu3 %v823_v5 }
 0x745   : > { %1041 = vrsqrt.f32 %v773_v2  ;;  %vm780_vm8 = vweird.f32 %v773_v2 }
 0x746   : > { %847 = vmatpush.msrb.mxu3 %v822_v7 }
 0x748   : > { %848 = vmatpush.msrb.mxu3 %v821_v10 }
 0x74a   : > { %849 = vmatpush.msrb.mxu3 %v820_v12 }
 0x74b   : > { %v1042_v6 = vpop.eup %1041 }
 0x74c   : > { %v775_v9 = vmul.f32 %v1042_v6, %v773_v2  ;;  %vm781_vm7 = vweird.f32 %v1042_v6  ;;  %850 = vmatpush.msrb.mxu3 %v819_v18 }
 0x74d   : > { %vm782_vm9 = vmor %vm780_vm8, %vm781_vm7 }
 0x74e   : > { %v776_v11 = vmul.f32 %v1042_v6, %v775_v9  ;;  %851 = vmatpush.msrb.mxu3 %v818_v19 }
 0x750   : > { %v777_v13 = vmul.f32 0.5, %v776_v11  ;;  %852 = vmatpush.msrb.mxu3 %v817_v20 }
 0x752   : > { %v778_v14 = vsub.f32 1.5, %v777_v13 }
 0x754   : > { %v779_v15 = vmul.f32 %v1042_v6, %v778_v14 }
 0x756   : > { %v783_v16 = vsel %vm782_vm9, %v1042_v6, %v779_v15 }
 0x757   : > { %v784_v17 = vmul.f32 %v783_v16, %v767_v51 }
 0x759   : > { %960 = vmatmul.msk.f32.vlgmr.msrb.gmra.mxu1 %vm329_vm0, %v784_v17 }
 0x7d6   : > { %v813_v22 = vpop.f32.mrf.mxu1 }
 0x7d7   : > { %v814_v23 = vadd.f32 %v1019_v21, %v813_v22 }
 0x7d9   : > { %v816_v24 = vmax.f32 %v814_v23, 0.0 }
 0x7db   : > { %853 = vmatmul.f32.vlgmr.msrb.gmra.mxu3 %v816_v24 }
 0x85e   : > { %v854_v26 = vpop.f32.mrf.mxu3 }
 0x85f   : > { %v855_v27 = vadd.f32 %v1020_v25, %v854_v26 }
 0x861   : > { %v857_v28 = vadd.f32 %v855_v27, %v1309_v47 }
 0x863   : > { %858 = vst.msk [vmem:[%s323_s23] sm:$0xff] %vm329_vm0, %v857_v28 }
 0x864   : > { %1070 = shalt.err (!%p1067_p3)
}
 0x865   : > { %965 = dma.vmem_to_hbm [thread:$0]  (%p1208_p5), %s873_s24, 128, %s875_s25, %s860_s13  }
 0x866 PF: > { %p971_p4 = scmp.ge.s32.totalorder %s1105_s12, 2  ;;  %s886_s27 = sand.u32 1, %s1093_s30  }
 0x867   : > { %s887_s22 = scalar_lea.sflag [#allocation3], %s886_s27 }
 0x868   : > { %p968_p7 = pnand %p971_p4, %p1212_p6 }
 0x86a   : > { %p969_p8 = pneg %p968_p7 }
 0x86c   : > { %1088 = dma.done.wait (%p969_p8), %s887_s22, 128  }
 0x86d   : > { %1090 = vsyncadd (%p969_p8), %s887_s22, 4294967168  ;;  %p19_p9 = scmp.ge.s32.totalorder %s1195_s15, 4   ;;  %s1430_s30 = smov %s1097_s10 }
 0x86e   : > { %s1431_s10 = smov %s1101_s11  ;;  %s1432_s11 = smov %s1206_s18 }
 0x86f   : > { %s1433_s12 = smov %s1195_s15  ;;  %21 = sbr.rel (!%p19_p9) target bundleno = 3 (0x3), region = 94 }
 0x874   :  { %893 = vsyncpa [#allocation3], 1 }
 0x875   :  { %895 = vsyncpa [#allocation3 + $0x1], 1 }

</bundles_post_ra>
